<compile_context>
chip_gen: v6e
topology: v6e:2x2x1
jax: 0.10.0
libtpu: 0.0.40
codegen_flags: <defaults>
</compile_context>

<pallas_src>
import functools

import jax
import jax.numpy as jnp
from jax import lax
from jax.experimental import pallas as pl
from jax.experimental.pallas import tpu as pltpu


# ---------------------------------------------------------------------------
# Hardware / tiling helpers
# ---------------------------------------------------------------------------
def _vmem_capacity_bytes():
    try:
        info = pltpu.get_tpu_info()
        cap = getattr(info, "vmem_capacity_bytes", None)
        if cap:
            return int(cap)
    except Exception:
        pass
    return 64 * 1024 * 1024  # conservative default (v7x per-core VMEM)


def _channel_block_candidates(c):
    """Legal channel block sizes (multiples of 8 dividing C, or C itself)."""
    if c % 8 == 0:
        cands = [b for b in range(8, c + 1, 8) if c % b == 0]
    else:
        cands = [c]
    return sorted(set(cands), reverse=True)


def _pick_block(dim, unit, max_block):
    """Largest multiple of `unit` dividing `dim`, capped at `max_block`.
    Falls back to the full extent (always legal) if `dim % unit != 0`."""
    if dim % unit != 0:
        return dim
    best = unit
    b = unit
    limit = min(dim, max_block)
    while b <= limit:
        if dim % b == 0:
            best = b
        b += unit
    return best


def _pick_n_block(n, bytes_per_n, target_bytes):
    """Largest divisor of n whose block stays under ~target_bytes."""
    bn = int(max(1, min(n, target_bytes // max(bytes_per_n, 1))))
    while n % bn != 0:
        bn -= 1
    return bn


def _fused_footprint_bytes(n, hw, block_c, itemsize):
    slab = n * block_c * hw * itemsize       # one (n, block_c, hw) block
    temps = 6 * block_c * hw * 4             # f32 row temporaries in the loops
    return 4 * slab + temps + (1 << 20)      # 2x in + 2x out buffers + margin


# ---------------------------------------------------------------------------
# Fused kernel: stats + apply with the channel slab resident in VMEM (1R + 1W)
# ---------------------------------------------------------------------------
def _fused_kernel(x_ref, gamma_ref, beta_ref, rmean_ref, rstd_ref,
                  y_ref, new_rmean_ref, new_rstd_ref,
                  *, n, m_total, eps, momentum, r_max, d_max, apply_dtype):
    bc = x_ref.shape[1]

    # Pass A: per-channel mean (slab already in VMEM -> one HBM read total).
    def _sum_body(i, s):
        xi = x_ref[i].astype(jnp.float32)               # (BC, HW)
        return s + jnp.sum(xi, axis=1, keepdims=True)
    s1 = lax.fori_loop(0, n, _sum_body, jnp.zeros((bc, 1), jnp.float32))
    mean = s1 * (1.0 / m_total)

    # Pass B: unbiased variance around the exact mean (cancellation-free).
    def _var_body(i, s):
        xc = x_ref[i].astype(jnp.float32) - mean
        return s + jnp.sum(xc * xc, axis=1, keepdims=True)
    s2 = lax.fori_loop(0, n, _var_body, jnp.zeros((bc, 1), jnp.float32))
    denom = float(m_total - 1) if m_total > 1 else 1.0
    var = s2 * (1.0 / denom)
    std = jnp.clip(jnp.sqrt(jnp.maximum(var, 0.0)), eps, 1.0e10)

    gamma = gamma_ref[...].astype(jnp.float32)
    beta = beta_ref[...].astype(jnp.float32)
    rmean = rmean_ref[...].astype(jnp.float32)
    rstd = rstd_ref[...].astype(jnp.float32)

    # Training-branch renorm factors; faithful to the PyTorch module (no
    # epsilon on the running std -- inf from rstd==0 is clipped away).
    r = jnp.clip(std / rstd, 1.0 / r_max, r_max)
    d = jnp.clip((mean - rmean) / rstd, -d_max, d_max)

    inv_std = 1.0 / std
    scale = gamma * r * inv_std
    bias = beta + gamma * (d - r * mean * inv_std)

    new_rmean_ref[...] = (rmean + momentum * (mean - rmean)).astype(new_rmean_ref.dtype)
    new_rstd_ref[...] = (rstd + momentum * (std - rstd)).astype(new_rstd_ref.dtype)

    scale_c = scale.astype(apply_dtype)
    bias_c = bias.astype(apply_dtype)

    # Pass C: y = x*scale + bias straight from the resident slab.
    @pl.loop(0, n)
    def _(i):
        xi = x_ref[i]
        if xi.dtype != apply_dtype:
            xi = xi.astype(apply_dtype)
        y_ref[i] = (xi * scale_c + bias_c).astype(y_ref.dtype)


# ---------------------------------------------------------------------------
# Two-pass fallback, pass 1: running-mean-shifted per-lane sum / sum-of-squares
# ---------------------------------------------------------------------------
def _stats_kernel(x_ref, rmean_ref, s1_ref, s2_ref, sum_acc, sumsq_acc):
    ni = pl.program_id(1)
    hwi = pl.program_id(2)

    @pl.when(jnp.logical_and(ni == 0, hwi == 0))
    def _():
        sum_acc[...] = jnp.zeros_like(sum_acc)
        sumsq_acc[...] = jnp.zeros_like(sumsq_acc)

    # x block: (BN, BC, BHW).  Shift by the running mean for conditioning and
    # accumulate per-lane (pure VPU adds); the single 128->1 cross-lane XLU
    # reduce happens once per channel tile in the epilogue below.
    x = x_ref[...].astype(jnp.float32)
    shift = rmean_ref[...].astype(jnp.float32)[None, :, :]
    xc = x - shift
    sum_acc[...] += jnp.sum(xc, axis=0)            # (BC, BHW)
    sumsq_acc[...] += jnp.sum(xc * xc, axis=0)     # (BC, BHW)

    last = jnp.logical_and(ni == pl.num_programs(1) - 1,
                           hwi == pl.num_programs(2) - 1)

    @pl.when(last)
    def _():
        s1_ref[...] = jnp.sum(sum_acc[...], axis=1, keepdims=True)
        s2_ref[...] = jnp.sum(sumsq_acc[...], axis=1, keepdims=True)


# ---------------------------------------------------------------------------
# Two-pass fallback, pass 2: elementwise y = x * scale[c] + bias[c]
# ---------------------------------------------------------------------------
def _apply_kernel(x_ref, scale_ref, bias_ref, y_ref, *, compute_dtype):
    x = x_ref[...]
    if x.dtype != compute_dtype:
        x = x.astype(compute_dtype)
    scale = scale_ref[...].astype(compute_dtype)   # (BC, 1)
    bias = bias_ref[...].astype(compute_dtype)     # (BC, 1)
    y_ref[...] = (x * scale[None, :, :] + bias[None, :, :]).astype(y_ref.dtype)


# ---------------------------------------------------------------------------
# Wrapper
# ---------------------------------------------------------------------------
def batch_renorm_2d(x, gamma, beta, running_mean, running_std,
                    *, eps=1e-5, momentum=0.01, r_max=1.0, d_max=0.0,
                    force_two_pass=False):
    """Forward of BatchRenormalization2D (training mode).

    x:            (N, C, H, W)
    gamma, beta:  (1, C, 1, 1)
    running_mean, running_std: (1, C, 1, 1)
    Returns (y, new_running_mean, new_running_std).
    """
    n, c, h, w = x.shape
    hw = h * w
    m_total = n * hw
    itemsize = jnp.dtype(x.dtype).itemsize  # real itemsize (f32 only in vregs)
    apply_dtype = (jnp.bfloat16
                   if jnp.dtype(x.dtype) == jnp.dtype(jnp.bfloat16)
                   else jnp.float32)

    # NCHW -> (N, C, H*W): a pure reshape, no data movement / transpose pass.
    x3 = x.reshape(n, c, hw)
    gamma2 = gamma.reshape(c, 1).astype(jnp.float32)
    beta2 = beta.reshape(c, 1).astype(jnp.float32)
    rmean2 = running_mean.reshape(c, 1).astype(jnp.float32)
    rstd2 = running_std.reshape(c, 1).astype(jnp.float32)

    vmem_cap = _vmem_capacity_bytes()
    vmem_limit = int(min(vmem_cap * 3 // 4, 96 * 1024 * 1024))
    big_vmem = vmem_limit >= 64 * 1024 * 1024

    # ---- pick the fused path when a full channel slab fits in VMEM ----------
    fused_block_c = None
    if not force_two_pass:
        cands = _channel_block_candidates(c)
        if c >= 16 and c % 8 == 0:
            # Guarantee >= 2 channel tiles for megacore sharding on v7x.
            capped = [b for b in cands if b <= max(8, c // 2)]
            if capped:
                cands = capped
        for bc in cands:
            if _fused_footprint_bytes(n, hw, bc, itemsize) <= vmem_limit:
                fused_block_c = bc
                break

    if fused_block_c is not None:
        block_c = fused_block_c
        grid = (c // block_c,)
        x_spec = pl.BlockSpec((n, block_c, hw), lambda ci: (0, ci, 0))
        ch_spec = pl.BlockSpec((block_c, 1), lambda ci: (ci, 0))

        kernel = functools.partial(
            _fused_kernel, n=n, m_total=m_total, eps=float(eps),
            momentum=float(momentum), r_max=float(r_max), d_max=float(d_max),
            apply_dtype=apply_dtype)

        y3, new_rmean2, new_rstd2 = pl.pallas_call(
            kernel,
            out_shape=(jax.ShapeDtypeStruct((n, c, hw), x.dtype),
                       jax.ShapeDtypeStruct((c, 1), jnp.float32),
                       jax.ShapeDtypeStruct((c, 1), jnp.float32)),
            grid_spec=pltpu.PrefetchScalarGridSpec(
                num_scalar_prefetch=0,
                grid=grid,
                in_specs=[x_spec, ch_spec, ch_spec, ch_spec, ch_spec],
                out_specs=[x_spec, ch_spec, ch_spec]),
            compiler_params=pltpu.CompilerParams(
                dimension_semantics=("parallel",),
                vmem_limit_bytes=vmem_limit),
        )(x3, gamma2, beta2, rmean2, rstd2)

    else:
        # ---- two-pass fallback (slab too large for VMEM) --------------------
        lane_cap = 4096 if big_vmem else 2048
        block_hw = _pick_block(hw, 128, lane_cap)
        c_cap = 64
        if c >= 16 and c % 8 == 0:
            c_cap = min(c_cap, max(8, c // 2))   # >= 2 channel tiles on v7x
        block_c = _pick_block(c, 8, c_cap)
        target_bytes = (4 if big_vmem else 2) * 1024 * 1024
        block_n = _pick_n_block(n, block_c * block_hw * itemsize, target_bytes)

        grid = (c // block_c, n // block_n, hw // block_hw)

        x_spec = pl.BlockSpec((block_n, block_c, block_hw),
                              lambda ci, ni, hwi: (ni, ci, hwi))
        ch_spec = pl.BlockSpec((block_c, 1), lambda ci, ni, hwi: (ci, 0))

        s1, s2 = pl.pallas_call(
            _stats_kernel,
            out_shape=(jax.ShapeDtypeStruct((c, 1), jnp.float32),
                       jax.ShapeDtypeStruct((c, 1), jnp.float32)),
            grid_spec=pltpu.PrefetchScalarGridSpec(
                num_scalar_prefetch=0,
                grid=grid,
                in_specs=[x_spec, ch_spec],
                out_specs=[ch_spec, ch_spec],
                scratch_shapes=[pltpu.VMEM((block_c, block_hw), jnp.float32),
                                pltpu.VMEM((block_c, block_hw), jnp.float32)]),
            compiler_params=pltpu.CompilerParams(
                dimension_semantics=("parallel", "arbitrary", "arbitrary"),
                vmem_limit_bytes=vmem_limit),
        )(x3, rmean2)

        # Tiny per-channel epilogue in plain JAX (negligible FLOPs); shifted
        # sums keep the variance well-conditioned.
        denom = float(m_total - 1) if m_total > 1 else 1.0
        mean = rmean2 + s1 / m_total
        var = (s2 - s1 * s1 / m_total) / denom
        std = jnp.clip(jnp.sqrt(jnp.maximum(var, 0.0)), eps, 1.0e10)
        r = jnp.clip(std / rstd2, 1.0 / r_max, r_max)
        d = jnp.clip((mean - rmean2) / rstd2, -d_max, d_max)
        inv_std = 1.0 / std
        scale = gamma2 * r * inv_std
        bias = beta2 + gamma2 * (d - r * mean * inv_std)
        new_rmean2 = rmean2 + momentum * (mean - rmean2)
        new_rstd2 = rstd2 + momentum * (std - rstd2)

        y3 = pl.pallas_call(
            functools.partial(_apply_kernel, compute_dtype=apply_dtype),
            out_shape=jax.ShapeDtypeStruct((n, c, hw), x.dtype),
            grid_spec=pltpu.PrefetchScalarGridSpec(
                num_scalar_prefetch=0,
                grid=grid,
                in_specs=[x_spec, ch_spec, ch_spec],
                out_specs=x_spec),
            compiler_params=pltpu.CompilerParams(
                dimension_semantics=("parallel", "parallel", "parallel"),
                vmem_limit_bytes=vmem_limit),
        )(x3, scale, bias)

    y = y3.reshape(n, c, h, w)
    return (y,
            new_rmean2.reshape(1, c, 1, 1),
            new_rstd2.reshape(1, c, 1, 1))


# ---------------------------------------------------------------------------
# Pure-JAX reference mirroring the PyTorch training forward
# ---------------------------------------------------------------------------
def _reference(x, gamma, beta, running_mean, running_std,
               *, eps=1e-5, momentum=0.01, r_max=1.0, d_max=0.0):
    mean = jnp.mean(x, axis=(0, 2, 3), keepdims=True)
    std = jnp.clip(jnp.std(x, axis=(0, 2, 3), keepdims=True, ddof=1), eps, 1e10)
    r = jnp.clip(std / running_std, 1.0 / r_max, r_max)
    d = jnp.clip((mean - running_mean) / running_std, -d_max, d_max)
    y = (x - mean) * r / std + d
    y = gamma * y + beta
    new_rmean = running_mean + momentum * (mean - running_mean)
    new_rstd = running_std + momentum * (std - running_std)
    return y, new_rmean, new_rstd


if __name__ == "__main__":
    num_features = 4
    N, C, H, W = 2, num_features, 16, 16

    key = jax.random.PRNGKey(0)
    x = jax.random.normal(key, (N, C, H, W), dtype=jnp.float32)

    # Deterministic parameter init matching the module's __init__.
    gamma = jnp.ones((1, C, 1, 1), jnp.float32)
    beta = jnp.zeros((1, C, 1, 1), jnp.float32)
    running_avg_mean = jnp.ones((1, C, 1, 1), jnp.float32)
    running_avg_std = jnp.zeros((1, C, 1, 1), jnp.float32)
    # Module state at step 0: r_max=1.0, d_max=0.0, momentum=0.01, eps=1e-5.

    y_ref, rm_ref, rs_ref = _reference(
        x, gamma, beta, running_avg_mean, running_avg_std,
        eps=1e-5, momentum=0.01, r_max=1.0, d_max=0.0)

    # Fused (VMEM-resident slab, 1R + 1W) path.
    y, new_rm, new_rs = batch_renorm_2d(
        x, gamma, beta, running_avg_mean, running_avg_std,
        eps=1e-5, momentum=0.01, r_max=1.0, d_max=0.0)
    jax.block_until_ready((y, new_rm, new_rs))
    assert jnp.allclose(y, y_ref, atol=1e-4, rtol=1e-4)
    assert jnp.allclose(new_rm, rm_ref, atol=1e-6, rtol=1e-6)
    assert jnp.allclose(new_rs, rs_ref, atol=1e-6, rtol=1e-6)

    # Two-pass fallback path (used when the channel slab exceeds VMEM).
    y2, new_rm2, new_rs2 = batch_renorm_2d(
        x, gamma, beta, running_avg_mean, running_avg_std,
        eps=1e-5, momentum=0.01, r_max=1.0, d_max=0.0, force_two_pass=True)
    jax.block_until_ready((y2, new_rm2, new_rs2))
    assert jnp.allclose(y2, y_ref, atol=1e-4, rtol=1e-4)
    assert jnp.allclose(new_rm2, rm_ref, atol=1e-6, rtol=1e-6)
    assert jnp.allclose(new_rs2, rs_ref, atol=1e-6, rtol=1e-6)

    # TODO(synk): r_max / d_max increments and running-stat persistence are
    # training-loop state mutations; updated running stats are returned as
    # extra outputs instead of mutated in place.
    print("KERNEL_OK")
</pallas_src>

<mosaic_0001>
module attributes {stable_mosaic.version = 11 : i64} {
  func.func @_fused_kernel(%arg0: i32, %arg1: memref<2x4x256xf32, #tpu.memory_space<vmem>>, %arg2: memref<4x1xf32, #tpu.memory_space<vmem>>, %arg3: memref<4x1xf32, #tpu.memory_space<vmem>>, %arg4: memref<4x1xf32, #tpu.memory_space<vmem>>, %arg5: memref<4x1xf32, #tpu.memory_space<vmem>>, %arg6: memref<2x4x256xf32, #tpu.memory_space<vmem>>, %arg7: memref<4x1xf32, #tpu.memory_space<vmem>>, %arg8: memref<4x1xf32, #tpu.memory_space<vmem>>) attributes {dimension_semantics = [#tpu.dimension_semantics<parallel>], iteration_bounds = array<i64: 1>, scalar_prefetch = 0 : i64, scratch_operands = 0 : i64, tpu.core_type = #tpu.core_type<tc>, window_params = [{transform_indices = @transform_0, window_bounds = array<i64: 2, 4, 256>}, {transform_indices = @transform_1, window_bounds = array<i64: 4, 1>}, {transform_indices = @transform_2, window_bounds = array<i64: 4, 1>}, {transform_indices = @transform_3, window_bounds = array<i64: 4, 1>}, {transform_indices = @transform_4, window_bounds = array<i64: 4, 1>}, {transform_indices = @transform_5, window_bounds = array<i64: 2, 4, 256>}, {transform_indices = @transform_6, window_bounds = array<i64: 4, 1>}, {transform_indices = @transform_7, window_bounds = array<i64: 4, 1>}]} {
    %cst = arith.constant 0.000000e+00 : f32
    %0 = vector.broadcast %cst : f32 to vector<4x1xf32>
    %c0_i32 = arith.constant 0 : i32
    %c2_i32 = arith.constant 2 : i32
    %1 = arith.addi %c0_i32, %c2_i32 : i32
    %c1_i32 = arith.constant 1 : i32
    %2 = scf.for %arg9 = %c0_i32 to %1 step %c1_i32 iter_args(%arg10 = %0) -> (vector<4x1xf32>)  : i32 {
      %52 = arith.index_cast %arg9 : i32 to index
      %c0_33 = arith.constant 0 : index
      %c0_34 = arith.constant 0 : index
      %53 = vector.load %arg1[%52, %c0_33, %c0_34] : memref<2x4x256xf32, #tpu.memory_space<vmem>>, vector<1x4x256xf32>
      %54 = vector.shape_cast %53 : vector<1x4x256xf32> to vector<4x256xf32>
      %cst_35 = arith.constant dense<0.000000e+00> : vector<4xf32>
      %55 = vector.multi_reduction <add>, %54, %cst_35 [1] : vector<4x256xf32> to vector<4xf32>
      %56 = vector.shape_cast %55 : vector<4xf32> to vector<4x1xf32>
      %57 = arith.addf %arg10, %56 : vector<4x1xf32>
      scf.yield %57 : vector<4x1xf32>
    }
    %c2_i32_0 = arith.constant 2 : i32
    %cst_1 = arith.constant 0.001953125 : f32
    %3 = vector.broadcast %cst_1 : f32 to vector<4x1xf32>
    %4 = arith.mulf %2, %3 : vector<4x1xf32>
    %cst_2 = arith.constant 0.000000e+00 : f32
    %5 = vector.broadcast %cst_2 : f32 to vector<4x1xf32>
    %c0_i32_3 = arith.constant 0 : i32
    %c2_i32_4 = arith.constant 2 : i32
    %6 = arith.addi %c0_i32_3, %c2_i32_4 : i32
    %c1_i32_5 = arith.constant 1 : i32
    %7 = scf.for %arg9 = %c0_i32_3 to %6 step %c1_i32_5 iter_args(%arg10 = %5) -> (vector<4x1xf32>)  : i32 {
      %52 = arith.index_cast %arg9 : i32 to index
      %c0_33 = arith.constant 0 : index
      %c0_34 = arith.constant 0 : index
      %53 = vector.load %arg1[%52, %c0_33, %c0_34] : memref<2x4x256xf32, #tpu.memory_space<vmem>>, vector<1x4x256xf32>
      %54 = vector.shape_cast %53 : vector<1x4x256xf32> to vector<4x256xf32>
      %55 = vector.broadcast %4 : vector<4x1xf32> to vector<4x256xf32>
      %56 = arith.subf %54, %55 : vector<4x256xf32>
      %57 = arith.mulf %56, %56 : vector<4x256xf32>
      %cst_35 = arith.constant dense<0.000000e+00> : vector<4xf32>
      %58 = vector.multi_reduction <add>, %57, %cst_35 [1] : vector<4x256xf32> to vector<4xf32>
      %59 = vector.shape_cast %58 : vector<4xf32> to vector<4x1xf32>
      %60 = arith.addf %arg10, %59 : vector<4x1xf32>
      scf.yield %60 : vector<4x1xf32>
    }
    %c2_i32_6 = arith.constant 2 : i32
    %cst_7 = arith.constant 0.00195694715 : f32
    %8 = vector.broadcast %cst_7 : f32 to vector<4x1xf32>
    %9 = arith.mulf %7, %8 : vector<4x1xf32>
    %cst_8 = arith.constant 0.000000e+00 : f32
    %10 = vector.broadcast %cst_8 : f32 to vector<4x1xf32>
    %11 = arith.maximumf %9, %10 : vector<4x1xf32>
    %12 = math.sqrt %11 : vector<4x1xf32>
    %cst_9 = arith.constant 9.99999974E-6 : f32
    %cst_10 = arith.constant 1.000000e+10 : f32
    %13 = vector.broadcast %cst_9 : f32 to vector<4x1xf32>
    %14 = arith.maximumf %13, %12 : vector<4x1xf32>
    %15 = vector.broadcast %cst_10 : f32 to vector<4x1xf32>
    %16 = arith.minimumf %15, %14 : vector<4x1xf32>
    %c0 = arith.constant 0 : index
    %c0_11 = arith.constant 0 : index
    %17 = vector.load %arg2[%c0, %c0_11] : memref<4x1xf32, #tpu.memory_space<vmem>>, vector<4x1xf32>
    %c0_12 = arith.constant 0 : index
    %c0_13 = arith.constant 0 : index
    %18 = vector.load %arg3[%c0_12, %c0_13] : memref<4x1xf32, #tpu.memory_space<vmem>>, vector<4x1xf32>
    %c0_14 = arith.constant 0 : index
    %c0_15 = arith.constant 0 : index
    %19 = vector.load %arg4[%c0_14, %c0_15] : memref<4x1xf32, #tpu.memory_space<vmem>>, vector<4x1xf32>
    %c0_16 = arith.constant 0 : index
    %c0_17 = arith.constant 0 : index
    %20 = vector.load %arg5[%c0_16, %c0_17] : memref<4x1xf32, #tpu.memory_space<vmem>>, vector<4x1xf32>
    %21 = arith.divf %16, %20 : vector<4x1xf32>
    %cst_18 = arith.constant 1.000000e+00 : f32
    %cst_19 = arith.constant 1.000000e+00 : f32
    %22 = vector.broadcast %cst_18 : f32 to vector<4x1xf32>
    %23 = arith.maximumf %22, %21 : vector<4x1xf32>
    %24 = vector.broadcast %cst_19 : f32 to vector<4x1xf32>
    %25 = arith.minimumf %24, %23 : vector<4x1xf32>
    %26 = arith.subf %4, %19 : vector<4x1xf32>
    %27 = arith.divf %26, %20 : vector<4x1xf32>
    %cst_20 = arith.constant -0.000000e+00 : f32
    %cst_21 = arith.constant 0.000000e+00 : f32
    %28 = vector.broadcast %cst_20 : f32 to vector<4x1xf32>
    %29 = arith.maximumf %28, %27 : vector<4x1xf32>
    %30 = vector.broadcast %cst_21 : f32 to vector<4x1xf32>
    %31 = arith.minimumf %30, %29 : vector<4x1xf32>
    %cst_22 = arith.constant 1.000000e+00 : f32
    %32 = vector.broadcast %cst_22 : f32 to vector<4x1xf32>
    %33 = arith.divf %32, %16 : vector<4x1xf32>
    %34 = arith.mulf %17, %25 : vector<4x1xf32>
    %35 = arith.mulf %34, %33 : vector<4x1xf32>
    %36 = arith.mulf %25, %4 : vector<4x1xf32>
    %37 = arith.mulf %36, %33 : vector<4x1xf32>
    %38 = arith.subf %31, %37 : vector<4x1xf32>
    %39 = arith.mulf %17, %38 : vector<4x1xf32>
    %40 = arith.addf %18, %39 : vector<4x1xf32>
    %41 = arith.subf %4, %19 : vector<4x1xf32>
    %cst_23 = arith.constant 0.00999999977 : f32
    %42 = vector.broadcast %cst_23 : f32 to vector<4x1xf32>
    %43 = arith.mulf %42, %41 : vector<4x1xf32>
    %44 = arith.addf %19, %43 : vector<4x1xf32>
    %c0_24 = arith.constant 0 : index
    %c0_25 = arith.constant 0 : index
    %45 = vector.load %arg7[%c0_24, %c0_25] : memref<4x1xf32, #tpu.memory_space<vmem>>, vector<4x1xf32>
    tpu.vector_store %arg7[%c0_24, %c0_25], %44 {strides = array<i32>} : memref<4x1xf32, #tpu.memory_space<vmem>>, vector<4x1xf32>,
    %46 = arith.subf %16, %20 : vector<4x1xf32>
    %cst_26 = arith.constant 0.00999999977 : f32
    %47 = vector.broadcast %cst_26 : f32 to vector<4x1xf32>
    %48 = arith.mulf %47, %46 : vector<4x1xf32>
    %49 = arith.addf %20, %48 : vector<4x1xf32>
    %c0_27 = arith.constant 0 : index
    %c0_28 = arith.constant 0 : index
    %50 = vector.load %arg8[%c0_27, %c0_28] : memref<4x1xf32, #tpu.memory_space<vmem>>, vector<4x1xf32>
    tpu.vector_store %arg8[%c0_27, %c0_28], %49 {strides = array<i32>} : memref<4x1xf32, #tpu.memory_space<vmem>>, vector<4x1xf32>,
    %c0_i32_29 = arith.constant 0 : i32
    %c2_i32_30 = arith.constant 2 : i32
    %51 = arith.addi %c0_i32_29, %c2_i32_30 : i32
    %c1_i32_31 = arith.constant 1 : i32
    scf.for %arg9 = %c0_i32_29 to %51 step %c1_i32_31  : i32 {
      %c1_i32_33 = arith.constant 1 : i32
      %52 = arith.muli %arg9, %c1_i32_33 : i32
      %c0_i32_34 = arith.constant 0 : i32
      %53 = arith.addi %c0_i32_34, %52 : i32
      %54 = arith.index_cast %53 : i32 to index
      %c0_35 = arith.constant 0 : index
      %c0_36 = arith.constant 0 : index
      %55 = vector.load %arg1[%54, %c0_35, %c0_36] : memref<2x4x256xf32, #tpu.memory_space<vmem>>, vector<1x4x256xf32>
      %56 = vector.shape_cast %55 : vector<1x4x256xf32> to vector<4x256xf32>
      %57 = vector.broadcast %35 : vector<4x1xf32> to vector<4x256xf32>
      %58 = arith.mulf %56, %57 : vector<4x256xf32>
      %59 = vector.broadcast %40 : vector<4x1xf32> to vector<4x256xf32>
      %60 = arith.addf %58, %59 : vector<4x256xf32>
      %61 = arith.index_cast %53 : i32 to index
      %c0_37 = arith.constant 0 : index
      %c0_38 = arith.constant 0 : index
      %62 = vector.load %arg6[%61, %c0_37, %c0_38] : memref<2x4x256xf32, #tpu.memory_space<vmem>>, vector<1x4x256xf32>
      %63 = vector.shape_cast %62 : vector<1x4x256xf32> to vector<4x256xf32>
      %64 = vector.shape_cast %60 : vector<4x256xf32> to vector<1x4x256xf32>
      tpu.vector_store %arg6[%61, %c0_37, %c0_38], %64 {strides = array<i32>} : memref<2x4x256xf32, #tpu.memory_space<vmem>>, vector<1x4x256xf32>,
    }
    %c2_i32_32 = arith.constant 2 : i32
    return
  }
  func.func @transform_0(%arg0: i32) -> (i32, i32, i32) {
    %c0_i32 = arith.constant 0 : i32
    %c0_i32_0 = arith.constant 0 : i32
    %c0_i32_1 = arith.constant 0 : i32
    return %c0_i32, %arg0, %c0_i32_0 : i32, i32, i32
  }
  func.func @transform_1(%arg0: i32) -> (i32, i32) {
    %c0_i32 = arith.constant 0 : i32
    %c0_i32_0 = arith.constant 0 : i32
    return %arg0, %c0_i32 : i32, i32
  }
  func.func @transform_2(%arg0: i32) -> (i32, i32) {
    %c0_i32 = arith.constant 0 : i32
    %c0_i32_0 = arith.constant 0 : i32
    return %arg0, %c0_i32 : i32, i32
  }
  func.func @transform_3(%arg0: i32) -> (i32, i32) {
    %c0_i32 = arith.constant 0 : i32
    %c0_i32_0 = arith.constant 0 : i32
    return %arg0, %c0_i32 : i32, i32
  }
  func.func @transform_4(%arg0: i32) -> (i32, i32) {
    %c0_i32 = arith.constant 0 : i32
    %c0_i32_0 = arith.constant 0 : i32
    return %arg0, %c0_i32 : i32, i32
  }
  func.func @transform_5(%arg0: i32) -> (i32, i32, i32) {
    %c0_i32 = arith.constant 0 : i32
    %c0_i32_0 = arith.constant 0 : i32
    %c0_i32_1 = arith.constant 0 : i32
    return %c0_i32, %arg0, %c0_i32_0 : i32, i32, i32
  }
  func.func @transform_6(%arg0: i32) -> (i32, i32) {
    %c0_i32 = arith.constant 0 : i32
    %c0_i32_0 = arith.constant 0 : i32
    return %arg0, %c0_i32 : i32, i32
  }
  func.func @transform_7(%arg0: i32) -> (i32, i32) {
    %c0_i32 = arith.constant 0 : i32
    %c0_i32_0 = arith.constant 0 : i32
    return %arg0, %c0_i32 : i32, i32
  }
}

</mosaic_0001>

<bundles_post_ra>
// kernel: tpu_custom_call.1
= control target key start
LH: loop header
LB: loop body
LE: loop exit
PB: predicated region body
PF: predicated region fallthrough
CT: control target
= control target key end

     0   :  { %13 = vsyncpa [#allocation3], 0  ;;  %v317_v0 = vmov 0.0   ;;  %s321_s24 = smov 0   ;;  %s428_s0 = inlined_call_operand.vmem [shape: f32[2,4,256], index: 0, kind: input, shape index: {}]   ;;  %s429_s1 = inlined_call_operand.vmem [shape: f32[4,1], index: 1, kind: input, shape index: {}]   ;;  %s430_s2 = inlined_call_operand.vmem [shape: f32[4,1], index: 2, kind: input, shape index: {}]   ;;  %s431_s3 = inlined_call_operand.vmem [shape: f32[4,1], index: 3, kind: input, shape index: {}]   ;;  %s432_s4 = inlined_call_operand.vmem [shape: f32[4,1], index: 4, kind: input, shape index: {}]   ;;  %s433_s5 = inlined_call_operand.hbm [shape: f32[2,4,256], index: 5, kind: output, shape index: {0}]   ;;  %s434_s6 = inlined_call_operand.vmem [shape: f32[4,1], index: 6, kind: output, shape index: {1}]   ;;  %s435_s7 = inlined_call_operand.vmem [shape: f32[4,1], index: 7, kind: output, shape index: {2}]  }
   0x1 LB: > { %s218_s25 = sshll.u32 %s323_s24, 3  ;;  %vm38_vm0 = vcmask 1043456   ;;  %s29_s24 = sadd.s32 1, %s323_s24   ;;  %s323_s24 = sphi %s321_s24, %s29_s24   ;;  %v319_v0 = vphi %v317_v0, %v318_v0  }
   0x2   : > { %s33_s28 = scalar_lea.vmem %s428_s0, %s218_s25  ;;  %p26_p0 = scmp.ge.s32.totalorder %s29_s24, 2  }
   0x3   : > { %v34_v1 = vld [vmem:[%s33_s28] sm:$0xff]  ;;  %v325_v9 = vmov (%p26_p0), 0.0   ;;  %s329_s29 = smov (%p26_p0), 0  }
   0x4   : > { %v36_v2 = vcombine.high %v34_v1, %v34_v1  ;;  %v39_v3 = vsel %vm38_vm0, %v34_v1, 0.0 }
   0x6   : > { %v40_v4 = vsel %vm38_vm0, %v36_v2, 0.0 }
   0x7   : > { %v41_v5 = vadd.f32 %v40_v4, %v39_v3 }
   0x9   : > { %42 = vadd.xlane.f32.xlu0 %v41_v5 }
  0x91   :  { %28 = sbr.rel (!%p26_p0) target bundleno = 1 (0x1), region = 81 }
  0x92   : > { %v43_v6 = vpop.xlane.xlu0 %42 }
  0x93   : > { %v44_v7 = vadd.f32 %v319_v0, %v43_v6  }
  0x95   : > { %v318_v0 = vmov %v44_v7   ;;  %v387_v8 = vmul.f32 (%p26_p0), 0.001953125, %v44_v7 }
  0x96 LB: > { %v61_v10 = vlaneseq  ;;  %v337_v11 = vmov 839922192   ;;  %s219_s30 = sshll.u32 %s331_s29, 3  ;;  %s51_s29 = sadd.s32 1, %s331_s29   ;;  %s331_s29 = sphi %s329_s29, %s51_s29   ;;  %v327_v9 = vphi %v325_v9, %v326_v9  }
  0x97   : > { %v59_v12 = vunpack.c.l.s4 %v337_v11  ;;  %s55_s10 = scalar_lea.vmem %s428_s0, %s219_s30  ;;  %p48_p1 = scmp.ge.s32.totalorder %s51_s29, 2  }
  0x98   : > { %v62_v13 = vshrl.u32 %v61_v10, 7  ;;  %v56_v16 = vld [vmem:[%s55_s10] sm:$0xff]  ;;  %vm112_vm1 = vcmask (%p48_p1), 3072  }
  0x99   : > { %v60_v14 = vunpack.c.0.s8 %v59_v12  ;;  %v91_v26 = vld [vmem:[%s431_s3] sm:$0xf] (%p48_p1) }
  0x9a   :  { %v97_v28 = vsub.f32 (%p48_p1), %v387_v8, %v91_v26  ;;  %v92_v32 = vld [vmem:[%s432_s4] sm:$0xf] (%p48_p1) }
  0x9b   : > { %v392_v15 = vsub.s32 %v60_v14, %v62_v13  ;;  %v89_v47 = vld [vmem:[%s429_s1] sm:$0xf] (%p48_p1) }
  0x9c   :  { %v110_v30 = vmul.f32 (%p48_p1), 0.01, %v97_v28  ;;  %v90_v56 = vld [vmem:[%s430_s2] sm:$0xf] (%p48_p1) }
  0x9d   : > { %v64_v17 = vrot.slane %v387_v8, %v392_v15 }
  0x9e   :  { %v111_v31 = vadd.f32 (%p48_p1), %v110_v30, %v91_v26 }
  0x9f   : > { %v66_v18 = vsub.f32 %v56_v16, %v64_v17 }
  0xa0   :  { %113 = vst.msk [vmem:[%s434_s6] sm:$0xf] (%p48_p1), %vm112_vm1, %v111_v31 }
  0xa1   : > { %v67_v19 = vmul.f32 %v66_v18, %v66_v18 }
  0xa3   : > { %v69_v20 = vcombine.high %v67_v19, %v67_v19  ;;  %v72_v21 = vsel %vm38_vm0, %v67_v19, 0.0 }
  0xa5   : > { %v73_v22 = vsel %vm38_vm0, %v69_v20, 0.0 }
  0xa6   : > { %v74_v23 = vadd.f32 %v73_v22, %v72_v21 }
  0xa8   : > { %75 = vadd.xlane.f32.xlu0 %v74_v23 }
 0x130   :  { %50 = sbr.rel (!%p48_p1) target bundleno = 150 (0x96), region = 92 }
 0x131   : > { %v76_v24 = vpop.xlane.xlu0 %75 }
 0x132   : > { %v77_v25 = vadd.f32 %v327_v9, %v76_v24  }
 0x134   : > { %v326_v9 = vmov %v77_v25   ;;  %v78_v27 = vmul.f32 (%p48_p1), 0.0019569471, %v77_v25 }
 0x136   :  { %v79_v29 = vmax.f32 %v78_v27, 0.0 }
 0x138   :  { %268 = vrsqrt.f32 %v79_v29  ;;  %vm82_vm2 = vcmp.eq.f32.partialorder %v79_v29, inf  ;;  %v85_v34 = vand.u32 2147483648, %v79_v29  ;;  %vm84_vm3 = vcmp.eq.f32.partialorder %v79_v29, 0.0 }
 0x139   :  { %270 = vrcp.f32 %v92_v32 }
 0x145   :  { %v269_v33 = vpop.eup %268 }
 0x146   :  { %v81_v35 = vmul.f32 %v269_v33, %v79_v29  ;;  %v271_v39 = vpop.eup %270 }
 0x147   :  { %v98_v48 = vmul.f32 %v271_v39, %v97_v28 }
 0x148   :  { %v83_v36 = vsel %vm82_vm2, %v79_v29, %v81_v35 }
 0x149   :  { %v86_v37 = vsel %vm84_vm3, %v85_v34, %v83_v36  ;;  %v214_v51 = vclamps-f32 %v98_v48, 0.0 }
 0x14a   :  { %v87_v38 = vmax.f32 %v86_v37, 1e-05 }
 0x14c   :  { %v88_v40 = vmin.f32 %v87_v38, 1e+10 }
 0x14e   :  { %v94_v41 = vmul.f32 %v271_v39, %v88_v40  ;;  %272 = vrcp.f32 %v88_v40  ;;  %v114_v42 = vsub.f32 %v88_v40, %v92_v32 }
 0x150   :  { %v95_v43 = vmax.f32 %v94_v41, 1.0  ;;  %v115_v44 = vmul.f32 0.01, %v114_v42 }
 0x152   :  { %v116_v45 = vadd.f32 %v115_v44, %v92_v32  ;;  %v96_v46 = vmin.f32 %v95_v43, 1.0 }
 0x154   :  { %117 = vst.msk [vmem:[%s435_s7] sm:$0xf] %vm112_vm1, %v116_v45  ;;  %v103_v49 = vmul.f32 %v96_v46, %v89_v47  ;;  %v105_v50 = vmul.f32 %v96_v46, %v387_v8  ;;  %s333_s7 = smov 0  }
 0x15b   :  { %v273_v52 = vpop.eup %272 }
 0x15c   :  { %v104_v53 = vmul.f32 %v273_v52, %v103_v49  ;;  %v106_v54 = vmul.f32 %v273_v52, %v105_v50 }
 0x15e   :  { %v107_v55 = vsub.f32 %v214_v51, %v106_v54 }
 0x160   :  { %v108_v57 = vmul.f32 %v107_v55, %v89_v47 }
 0x162   :  { %v109_v58 = vadd.f32 %v108_v57, %v90_v56 }
 0x163 LB: > { %v338_v59 = vmov 0   ;;  %s220_s1 = sshll.u32 %s335_s7, 3  ;;  %s123_s7 = sadd.s32 1, %s335_s7   ;;  %s335_s7 = sphi %s333_s7, %s123_s7  }
 0x164   : > { %274 = vset.pattern.permute.xlu0 %v338_v59  ;;  %s126_s22 = scalar_lea.vmem %s428_s0, %s220_s1  ;;  %s155_s2 = scalar_lea.vmem [#allocation2], %s220_s1 }
 0x165   : > { %130 = vperm.xlu0 %274, %v104_v53   ;;  %v127_v62 = vld [vmem:[%s126_s22] sm:$0xff]  ;;  %p120_p2 = scmp.ge.s32.totalorder %s123_s7, 2  }
 0x166   :  { %s339_s23 = smov (%p120_p2), [#allocation2]  }
 0x167   :  { %s162_s24 = sshll.u32 (%p120_p2), %s339_s23, 4  ;;  %s163_s24 = int_to_ptr.vmem [resolvable:$true] %s162_s24 }
 0x168   :  { %s275_s25 = scalar_lea.vmem (%p120_p2), %s163_s24, 256  ;;  %p280_p4 = scmp.lt.s32.totalorder (%p120_p2), %s163_s24, %s163_s24 }
 0x169   : > { %143 = vperm.xlu0 %274, %v109_v58   ;;  %p276_p3 = scmp.ne.s32.totalorder (%p120_p2), %s163_s24, %s275_s25  ;;  %p281_p5 = scmp.lt.s32.totalorder (%p120_p2), %s275_s25, %s275_s25 }
 0x16b   :  { %p282_p6 = por (%p120_p2), %p281_p5, %p280_p4 }
 0x16d   :  { %p283_p7 = pnand (%p120_p2), %p282_p6, %p276_p3 }
 0x1e0   : > { %v131_v60 = vpop.permute.xlu0 %130 }
 0x1e1   : > { %v138_v61 = vrot.slane %v131_v60, %v392_v15 }
 0x1e3   : > { %v140_v0 = vmul.f32 %v138_v61, %v127_v62 }
 0x1e4   : > { %v144_v63 = vpop.permute.xlu0 %143 }
 0x1e5   : > { %v151_v1 = vrot.slane %v144_v63, %v392_v15  ;;  %122 = sbr.rel (!%p120_p2) target bundleno = 355 (0x163), region = 103 }
 0x1e7   : > { %v153_v2 = vadd.f32 %v151_v1, %v140_v0 }
 0x1e9   : > { %156 = vst [vmem:[%s155_s2] sm:$0xff] %v153_v2 }
 0x1ea   :  { %286 = shalt.err (!%p283_p7)
}
 0x1eb   :  { %s340_s26 = smov 128   ;;  %s341_s27 = smov 8  }
 0x1ec   :  { %168 = dma.vmem_to_hbm [thread:$0]  %s163_s24, 256, %s433_s5, [#allocation3], %s340_s26, %s340_s26, %s341_s27  }
 0x1ed   :  { %315 = dma.done.wait [#allocation3], 256  }
 0x1ee   :  { %316 = vsyncadd [#allocation3], 4294967040 }
 0x1ef   :  { %180 = vsyncpa [#allocation3], 1 }

</bundles_post_ra>
